<compile_context>
chip_gen: v5e
topology: v5e:2x2
jax: 0.10.0
libtpu: 0.0.40
codegen_flags: <defaults>
</compile_context>

<pallas_src>
from functools import partial

import jax
import jax.numpy as jnp
from jax import lax
from jax.experimental import pallas as pl
from jax.experimental.pallas import tpu as pltpu


def _round_up(x, m):
    return (x + m - 1) // m * m


def _sublane_multiple(dtype):
    """Minimum sublane packing for the second-minor dim, per dtype width."""
    itemsize = jnp.dtype(dtype).itemsize
    return {4: 8, 2: 16, 1: 32}.get(itemsize, 8)


def _vmem_capacity_bytes():
    """Physical VMEM of the local TensorCore (128 MiB v5e/v6e, 64 MiB v7x)."""
    try:
        cap = getattr(pltpu.get_tpu_info(), "vmem_capacity_bytes", None)
        if cap:
            return int(cap)
    except Exception:
        pass
    return 128 * 1024 * 1024


# --------------------------------------------------------------------------- #
# Kernels
# --------------------------------------------------------------------------- #
def _dot(x, w, precision):
    # Contract x:(tm, tk) with w:(tk, tn) -> (tm, tn); K on the RHS sublane dim
    # is the MXU-native layout, no relayout needed.
    if x.dtype != w.dtype:
        common = jnp.promote_types(x.dtype, w.dtype)
        x = x.astype(common)
        w = w.astype(common)
    return lax.dot_general(
        x, w,
        dimension_numbers=(((1,), (0,)), ((), ())),
        preferred_element_type=jnp.float32,
        precision=precision,
    )


def _linear_kernel_single(x_ref, w_ref, b_ref, o_ref, *, precision):
    # Collapsed-K path: one dot per output tile, bias added directly.
    acc = _dot(x_ref[...], w_ref[...], precision)
    o_ref[...] = (acc + b_ref[...].astype(jnp.float32)).astype(o_ref.dtype)


def _linear_kernel_acc(x_ref, w_ref, b_ref, o_ref, acc_ref, *, precision):
    # Tiled-K path: f32 VMEM accumulator across the (innermost) reduction axis.
    k = pl.program_id(2)

    @pl.when(k == 0)
    def _():
        acc_ref[...] = jnp.zeros_like(acc_ref)

    acc_ref[...] += _dot(x_ref[...], w_ref[...], precision)

    @pl.when(k == pl.num_programs(2) - 1)
    def _():
        o_ref[...] = (acc_ref[...] + b_ref[...].astype(jnp.float32)).astype(o_ref.dtype)


# --------------------------------------------------------------------------- #
# Parameter prep (one-time, mirrors module init — NOT per forward call)
# --------------------------------------------------------------------------- #
def prepare_cls_head_params(weight, bias):
    """weight: (num_classes, embed_dim) PyTorch layout, bias: (num_classes,).

    Returns (w_dc, b_row, num_classes):
      w_dc:  (Dp, Cp)  weight transposed to (embed_dim, num_classes) and
             zero-padded so both dims are multiples of 128.
      b_row: (1, Cp)   bias zero-padded to the same Cp.
    """
    C, D = weight.shape
    Cp = _round_up(C, 128)
    Dp = _round_up(D, 128)
    w_dc = weight.T                       # (D, C): K on sublanes, C lane-dense
    if (Dp, Cp) != (D, C):
        w_dc = jnp.pad(w_dc, ((0, Dp - D), (0, Cp - C)))
    b_row = bias.reshape(1, C)
    if Cp != C:
        b_row = jnp.pad(b_row, ((0, 0), (0, Cp - C)))
    return w_dc, b_row, C


# --------------------------------------------------------------------------- #
# Forward
# --------------------------------------------------------------------------- #
def cls_head_forward(x, w_dc, b_row, num_classes, *, precision=None,
                     allow_xla_fallback=False):
    """Equivalent of PyTorch nn.Linear(embed_dim, num_classes)(x).

    x:            (..., embed_dim)
    w_dc, b_row:  outputs of prepare_cls_head_params()
    precision:    None (default MXU path) or lax.Precision.HIGHEST for strict f32.
    """
    orig_shape = x.shape
    D = orig_shape[-1]
    Dp, Cp = w_dc.shape
    x2d = x.reshape(-1, D)
    M = x2d.shape[0]
    out_dtype = x.dtype

    x_item = jnp.dtype(x2d.dtype).itemsize
    w_item = jnp.dtype(w_dc.dtype).itemsize
    b_item = jnp.dtype(b_row.dtype).itemsize
    o_item = jnp.dtype(out_dtype).itemsize

    # Optional fast path: a single-tile problem is dominated by pipeline/pad
    # overhead — plain XLA wins there.  Off by default so the kernel runs.
    if allow_xla_fallback and M <= 256 and Cp <= 512 and Dp <= 1024:
        out = jnp.dot(x2d, w_dc[:D], preferred_element_type=jnp.float32,
                      precision=precision)
        out = out[:, :num_classes] + b_row[0, :num_classes].astype(jnp.float32)
        return out.astype(out_dtype).reshape(*orig_shape[:-1], num_classes)

    # ---- Generation-aware budgets -------------------------------------- #
    vmem_cap = _vmem_capacity_bytes()
    vmem_budget = int(vmem_cap * 0.75)          # headroom for Mosaic scratch

    sub = _sublane_multiple(x2d.dtype)          # 8 f32 / 16 bf16 / 32 int8
    tn = next(t for t in (512, 384, 256, 128) if Cp % t == 0)
    tm_cap = 1024 if vmem_cap >= 100 * (1 << 20) else 512
    tm = min(tm_cap, _round_up(M, sub))

    def tile_vmem_bytes(tm_, tn_, tk_, with_acc):
        # double-buffered pipeline buffers per operand (+ f32 accumulator)
        b = 2 * (tm_ * tk_ * x_item + tk_ * tn_ * w_item
                 + tn_ * b_item + tm_ * tn_ * o_item)
        if with_acc:
            b += tm_ * tn_ * 4
        return b

    # Prefer collapsing the K axis (tk == Dp): no accumulator RMW, no per-step
    # grid overhead.  Only shrink tm down to 512 for it; below that the extra
    # weight re-reads of a small tm cost more than the accumulator traffic.
    collapse_k = False
    tk = Dp
    tm_c = tm
    while tm_c > 512 and tile_vmem_bytes(tm_c, tn, Dp, False) > vmem_budget:
        tm_c = max(512, _round_up(tm_c // 2, sub))
    if tile_vmem_bytes(tm_c, tn, Dp, False) <= vmem_budget:
        collapse_k = True
        tm = tm_c
    else:
        tk = next(t for t in (2048, 1024, 512, 256, 128) if Dp % t == 0)
        while tm > sub and tile_vmem_bytes(tm, tn, tk, True) > vmem_budget:
            tm = max(sub, _round_up(tm // 2, sub))

    Mp = _round_up(M, tm)

    # Only the activations may need padding per call (guarded).
    if (Mp, Dp) != (M, D):
        x_p = jnp.pad(x2d, ((0, Mp - M), (0, Dp - D)))
    else:
        x_p = x2d

    need = tile_vmem_bytes(tm, tn, tk, not collapse_k)
    vmem_limit = int(min(vmem_budget, max(int(need * 1.25) + (4 << 20), 16 << 20)))

    cost = pl.CostEstimate(
        flops=2 * M * D * num_classes,
        transcendentals=0,
        bytes_accessed=int(M * D * x_item + Dp * Cp * w_item
                           + Cp * b_item + M * num_classes * o_item),
    )

    if collapse_k:
        grid = (Mp // tm, Cp // tn)
        in_specs = [
            pl.BlockSpec((tm, Dp), lambda i, j: (i, 0)),     # x
            pl.BlockSpec((Dp, tn), lambda i, j: (0, j)),     # weight (D, C)
            pl.BlockSpec((1, tn), lambda i, j: (0, j)),      # bias
        ]
        out_spec = pl.BlockSpec((tm, tn), lambda i, j: (i, j))
        kernel = partial(_linear_kernel_single, precision=precision)
        scratch = []
        dims = ("parallel", "parallel")
    else:
        grid = (Mp // tm, Cp // tn, Dp // tk)
        in_specs = [
            pl.BlockSpec((tm, tk), lambda i, j, k: (i, k)),  # x
            pl.BlockSpec((tk, tn), lambda i, j, k: (k, j)),  # weight (D, C)
            pl.BlockSpec((1, tn), lambda i, j, k: (0, j)),   # bias
        ]
        out_spec = pl.BlockSpec((tm, tn), lambda i, j, k: (i, j))
        kernel = partial(_linear_kernel_acc, precision=precision)
        scratch = [pltpu.VMEM((tm, tn), jnp.float32)]
        dims = ("parallel", "parallel", "arbitrary")

    out_p = pl.pallas_call(
        kernel,
        out_shape=jax.ShapeDtypeStruct((Mp, Cp), out_dtype),
        grid_spec=pltpu.PrefetchScalarGridSpec(
            num_scalar_prefetch=0,
            grid=grid,
            in_specs=in_specs,
            out_specs=out_spec,
            scratch_shapes=scratch,
        ),
        compiler_params=pltpu.CompilerParams(
            dimension_semantics=dims,
            vmem_limit_bytes=vmem_limit,
        ),
        cost_estimate=cost,
    )(x_p, w_dc, b_row)

    out = out_p
    if (Mp, Cp) != (M, num_classes):
        out = out[:M, :num_classes]
    return out.reshape(*orig_shape[:-1], num_classes)


if __name__ == "__main__":
    # Small, deterministic example consistent with the module:
    # embed_dim=32, num_classes=16, x of shape (batch=2, seq=8, embed_dim=32)
    embed_dim = 32
    num_classes = 16
    batch, seq = 2, 8

    key = jax.random.PRNGKey(0)
    kx, kw, kb = jax.random.split(key, 3)

    x = jax.random.normal(kx, (batch, seq, embed_dim), dtype=jnp.float32)
    # PyTorch Linear parameter shapes: weight (out, in), bias (out,)
    weight = jax.random.normal(kw, (num_classes, embed_dim), dtype=jnp.float32) * 0.02
    bias = jax.random.normal(kb, (num_classes,), dtype=jnp.float32) * 0.02

    # One-time parameter prep (layout + padding) — per-call path pads x only.
    w_dc, b_row, C = prepare_cls_head_params(weight, bias)

    out = cls_head_forward(x, w_dc, b_row, C)
    out = jax.block_until_ready(out)

    # Cross-check against plain JAX reference (same math as nn.Linear forward).
    ref = x @ weight.T + bias
    assert out.shape == (batch, seq, num_classes)
    assert jnp.allclose(out, ref, atol=1e-4, rtol=1e-4)

    print("KERNEL_OK")
</pallas_src>

<mosaic_0001>
module attributes {stable_mosaic.version = 11 : i64} {
  func.func @_linear_kernel_single(%arg0: i32, %arg1: i32, %arg2: memref<16x128xf32, #tpu.memory_space<vmem>>, %arg3: memref<128x128xf32, #tpu.memory_space<vmem>>, %arg4: memref<1x128xf32, #tpu.memory_space<vmem>>, %arg5: memref<16x128xf32, #tpu.memory_space<vmem>>) attributes {dimension_semantics = [#tpu.dimension_semantics<parallel>, #tpu.dimension_semantics<parallel>], iteration_bounds = array<i64: 1, 1>, scalar_prefetch = 0 : i64, scratch_operands = 0 : i64, tpu.core_type = #tpu.core_type<tc>, window_params = [{transform_indices = @transform_0, window_bounds = array<i64: 16, 128>}, {transform_indices = @transform_1, window_bounds = array<i64: 128, 128>}, {transform_indices = @transform_2, window_bounds = array<i64: 1, 128>}, {transform_indices = @transform_3, window_bounds = array<i64: 16, 128>}]} {
    %c0 = arith.constant 0 : index
    %c0_0 = arith.constant 0 : index
    %0 = vector.load %arg2[%c0, %c0_0] : memref<16x128xf32, #tpu.memory_space<vmem>>, vector<16x128xf32>
    %c0_1 = arith.constant 0 : index
    %c0_2 = arith.constant 0 : index
    %1 = vector.load %arg3[%c0_1, %c0_2] : memref<128x128xf32, #tpu.memory_space<vmem>>, vector<128x128xf32>
    %cst = arith.constant dense<0.000000e+00> : vector<16x128xf32>
    %2 = tpu.matmul %0, %1, %cst {dimension_numbers = #tpu.dot_dimension_numbers<[1], [0], [0], [1], [0, 0, 1, 1], [], []>} : vector<16x128xf32>, vector<128x128xf32>, vector<16x128xf32> -> vector<16x128xf32>
    %c0_3 = arith.constant 0 : index
    %c0_4 = arith.constant 0 : index
    %3 = vector.load %arg4[%c0_3, %c0_4] : memref<1x128xf32, #tpu.memory_space<vmem>>, vector<1x128xf32>
    %4 = vector.broadcast %3 : vector<1x128xf32> to vector<16x128xf32>
    %5 = arith.addf %2, %4 : vector<16x128xf32>
    %c0_5 = arith.constant 0 : index
    %c0_6 = arith.constant 0 : index
    %6 = vector.load %arg5[%c0_5, %c0_6] : memref<16x128xf32, #tpu.memory_space<vmem>>, vector<16x128xf32>
    tpu.vector_store %arg5[%c0_5, %c0_6], %5 {strides = array<i32>} : memref<16x128xf32, #tpu.memory_space<vmem>>, vector<16x128xf32>,
    return
  }
  func.func @transform_0(%arg0: i32, %arg1: i32) -> (i32, i32) {
    %c0_i32 = arith.constant 0 : i32
    %c0_i32_0 = arith.constant 0 : i32
    return %arg0, %c0_i32 : i32, i32
  }
  func.func @transform_1(%arg0: i32, %arg1: i32) -> (i32, i32) {
    %c0_i32 = arith.constant 0 : i32
    %c0_i32_0 = arith.constant 0 : i32
    return %c0_i32, %arg1 : i32, i32
  }
  func.func @transform_2(%arg0: i32, %arg1: i32) -> (i32, i32) {
    %c0_i32 = arith.constant 0 : i32
    %c0_i32_0 = arith.constant 0 : i32
    return %c0_i32, %arg1 : i32, i32
  }
  func.func @transform_3(%arg0: i32, %arg1: i32) -> (i32, i32) {
    %c0_i32 = arith.constant 0 : i32
    return %arg0, %arg1 : i32, i32
  }
}

</mosaic_0001>

<bundles_post_ra>
// kernel: tpu_custom_call.1
= control target key start
LH: loop header
LB: loop body
LE: loop exit
PB: predicated region body
PF: predicated region fallthrough
CT: control target
= control target key end

     0   :  { %8 = vsyncpa [#allocation3], 0  ;;  %s260_s0 = inlined_call_operand.hbm [shape: f32[16,128], index: 0, kind: input, shape index: {}]   ;;  %s261_s1 = inlined_call_operand.hbm [shape: f32[128,128], index: 1, kind: input, shape index: {}]   ;;  %s262_s2 = inlined_call_operand.vmem [shape: f32[1,128], index: 2, kind: input, shape index: {}]   ;;  %s263_s3 = inlined_call_operand.hbm [shape: f32[16,128], index: 3, kind: output, shape index: {}]  }
   0x1   :  { %9 = vsyncpa [#allocation6], 0 }
   0x2   :  { %10 = vsyncpa [#allocation4], 0  ;;  %s15_s14 = sshll.u32 %s260_s0, 4  ;;  %s214_s15 = smov [#allocation2]   ;;  %s16_s14 = int_to_ptr.hbm [resolvable:$true] %s15_s14 }
   0x3   :  { %s17_s16 = sshll.u32 %s214_s15, 4  ;;  %s28_s19 = sshll.u32 %s261_s1, 4  ;;  %s18_s16 = int_to_ptr.vmem [resolvable:$true] %s17_s16  ;;  %s29_s19 = int_to_ptr.hbm [resolvable:$true] %s28_s19 }
   0x4   :  { %s215_s20 = smov 128   ;;  %s216_s21 = smov 8  }
   0x5   :  { %23 = dma.hbm_to_vmem [thread:$0]  %s16_s14, 256, %s18_s16, [#allocation3], %s215_s20, %s215_s20, %s216_s21  }
   0x6   :  { %s217_s22 = smov [#allocation5]  }
   0x7   :  { %s30_s23 = sshll.u32 %s217_s22, 4  ;;  %s31_s23 = int_to_ptr.vmem [resolvable:$true] %s30_s23 }
   0x8   :  { %36 = dma.hbm_to_vmem [thread:$0]  %s29_s19, 2048, %s31_s23, [#allocation6], %s215_s20, %s215_s20, %s216_s21  }
   0x9   :  { %208 = dma.done.wait [#allocation3], 256  }
   0xa   :  { %209 = vsyncadd [#allocation3], 4294967040 }
   0xb   :  { %210 = dma.done.wait [#allocation6], 2048  }
   0xc   :  { %211 = vsyncadd [#allocation6], 4294965248  ;;  %v64_v0 = vld [vmem:[#allocation5 + $0x78] sm:$0xff]  ;;  %v63_v1 = vld [vmem:[#allocation5 + $0x70] sm:$0xff]  ;;  %s218_s24 = smov [#allocation7]   ;;  %s100_s28 = sshll.u32 %s263_s3, 4  ;;  %s101_s28 = int_to_ptr.hbm [resolvable:$true] %s100_s28 }
   0xd   :  { %69 = vmatpush.msra.mxu0 %v64_v0  ;;  %114 = vmatpush.msra.mxu1 %v64_v0  ;;  %v62_v2 = vld [vmem:[#allocation5 + $0x68] sm:$0xff]  ;;  %v61_v3 = vld [vmem:[#allocation5 + $0x60] sm:$0xff]  ;;  %v60_v4 = vld [vmem:[#allocation5 + $0x58] sm:$0xff]  ;;  %s98_s25 = sshll.u32 %s218_s24, 4  ;;  %s99_s25 = int_to_ptr.vmem [resolvable:$true] %s98_s25 }
   0xe   :  { %v59_v5 = vld [vmem:[#allocation5 + $0x50] sm:$0xff]  ;;  %v58_v6 = vld [vmem:[#allocation5 + $0x48] sm:$0xff]  ;;  %v57_v7 = vld [vmem:[#allocation5 + $0x40] sm:$0xff] }
   0xf   :  { %70 = vmatpush.msra.mxu0 %v63_v1  ;;  %115 = vmatpush.msra.mxu1 %v63_v1  ;;  %v56_v8 = vld [vmem:[#allocation5 + $0x38] sm:$0xff]  ;;  %v55_v9 = vld [vmem:[#allocation5 + $0x30] sm:$0xff]  ;;  %v54_v10 = vld [vmem:[#allocation5 + $0x28] sm:$0xff] }
  0x10   :  { %v53_v11 = vld [vmem:[#allocation5 + $0x20] sm:$0xff]  ;;  %v52_v12 = vld [vmem:[#allocation5 + $0x18] sm:$0xff]  ;;  %v51_v13 = vld [vmem:[#allocation5 + $0x10] sm:$0xff] }
  0x11   :  { %71 = vmatpush.msra.mxu0 %v62_v2  ;;  %116 = vmatpush.msra.mxu1 %v62_v2  ;;  %v50_v14 = vld [vmem:[#allocation5 + $0x8] sm:$0xff]  ;;  %v49_v15 = vld [vmem:[#allocation5] sm:$0xff]  ;;  %v47_v16 = vld [vmem:[#allocation2] sm:$0xff] }
  0x12   :  { %v48_v17 = vld [vmem:[#allocation2 + $0x8] sm:$0xff]  ;;  %v135_v18 = vld [vmem:[%s262_s2] ss:$0 sm:$0xff] }
  0x13   :  { %72 = vmatpush.msra.mxu0 %v61_v3  ;;  %117 = vmatpush.msra.mxu1 %v61_v3 }
  0x15   :  { %73 = vmatpush.msra.mxu0 %v60_v4  ;;  %118 = vmatpush.msra.mxu1 %v60_v4 }
  0x17   :  { %74 = vmatpush.msra.mxu0 %v59_v5  ;;  %119 = vmatpush.msra.mxu1 %v59_v5 }
  0x19   :  { %75 = vmatpush.msra.mxu0 %v58_v6  ;;  %120 = vmatpush.msra.mxu1 %v58_v6 }
  0x1b   :  { %76 = vmatpush.msra.mxu0 %v57_v7  ;;  %121 = vmatpush.msra.mxu1 %v57_v7 }
  0x1d   :  { %77 = vmatpush.msra.mxu0 %v56_v8  ;;  %122 = vmatpush.msra.mxu1 %v56_v8 }
  0x1f   :  { %78 = vmatpush.msra.mxu0 %v55_v9  ;;  %123 = vmatpush.msra.mxu1 %v55_v9 }
  0x21   :  { %79 = vmatpush.msra.mxu0 %v54_v10  ;;  %124 = vmatpush.msra.mxu1 %v54_v10 }
  0x23   :  { %80 = vmatpush.msra.mxu0 %v53_v11  ;;  %125 = vmatpush.msra.mxu1 %v53_v11 }
  0x25   :  { %81 = vmatpush.msra.mxu0 %v52_v12  ;;  %126 = vmatpush.msra.mxu1 %v52_v12 }
  0x27   :  { %82 = vmatpush.msra.mxu0 %v51_v13  ;;  %127 = vmatpush.msra.mxu1 %v51_v13 }
  0x29   :  { %83 = vmatpush.msra.mxu0 %v50_v14  ;;  %128 = vmatpush.msra.mxu1 %v50_v14 }
  0x2b   :  { %84 = vmatpush.msra.mxu0 %v49_v15  ;;  %129 = vmatpush.msra.mxu1 %v49_v15 }
  0x2c   :  { %85 = vmatmul.f32.vlgmr.msra.gmra.mxu0 %v47_v16  ;;  %88 = vmatmul.f32.vlgmr.msra.gmra.mxu1 %v48_v17 }
  0xa9   :  { %v86_v19 = vpop.f32.mrf.mxu0  ;;  %v89_v20 = vpop.f32.mrf.mxu1 }
  0xaa   :  { %v87_v21 = vadd.f32 %v135_v18, %v86_v19  ;;  %v90_v22 = vadd.f32 %v135_v18, %v89_v20 }
  0xac   :  { %92 = vst [vmem:[#allocation7] sm:$0xff] %v87_v21 }
  0xad   :  { %93 = vst [vmem:[#allocation7 + $0x8] sm:$0xff] %v90_v22 }
  0xae   :  { %106 = dma.vmem_to_hbm [thread:$0]  %s99_s25, 256, %s101_s28, [#allocation4], %s215_s20, %s215_s20, %s216_s21  }
  0xaf   :  { %212 = dma.done.wait [#allocation4], 256  }
  0xb0   :  { %213 = vsyncadd [#allocation4], 4294967040 }
  0xb1   :  { %111 = vsyncpa [#allocation3], 1 }
  0xb2   :  { %112 = vsyncpa [#allocation6], 1 }
  0xb3   :  { %113 = vsyncpa [#allocation4], 1 }

</bundles_post_ra>
